<compile_context>
chip_gen: v7x
topology: tpu7x:2x2x1
jax: 0.10.0
libtpu: 0.0.40
codegen_flags: <defaults>
</compile_context>

<pallas_src>
import math
from functools import partial

import jax
import jax.numpy as jnp
from jax.experimental import pallas as pl
from jax.experimental.pallas import tpu as pltpu

STRIDE_H = 4
KH = 7
PAD_H = 3
OUT_PAD_H = 3


def _conv_t_kernel(x_ref, halo_ref, wk_ref, shift_ref, o_ref, *, w_len, tqw):
    """One (n, H-block) grid step.

    x_ref:     (Cin, TQ*W)      input rows q of this block, (q, w) flattened on lanes
    halo_ref:  (Cin, HALO)      window whose first W lanes are input row `block_end`
    wk_ref:    (4*Cout, 2*Cin)  phase-stacked weights (BN scale folded); cols
                                [0, Cin) apply to x[q], cols [Cin, 2*Cin) to x[q+1]
    shift_ref: (4*Cout, 1)      folded conv-bias + BN shift
    o_ref:     (4*Cout, TQ*W)   rows = (cout, phase), cols = (q, w)
    """
    is_last = pl.program_id(1) == pl.num_programs(1) - 1

    xc = x_ref[...]
    # Row q+1 for the last row of this block comes from the halo; it must be zero
    # on the last H-block (input row H does not exist / is discarded padding).
    nxt = jnp.where(is_last, 0.0, halo_ref[:, :w_len])              # (Cin, W)
    if tqw == w_len:                                                # degenerate TQ == 1
        xn = nxt
    else:
        xn = jnp.concatenate([xc[:, w_len:], nxt], axis=1)          # (Cin, TQ*W)
    # NOTE: a pltpu.roll-based shift was considered (review item 6); kept as
    # slice+concat because the halo tail would still need a masked placement and
    # the fused K=16 concat below materializes the shifted rows anyway.
    xcat = jnp.concatenate([xc, xn], axis=0)                        # (2*Cin, TQ*W)

    acc = jnp.dot(wk_ref[...], xcat, preferred_element_type=jnp.float32)
    acc = acc + shift_ref[...]
    # Minimal epilogue (v5e guardrail): shift add + ReLU + cast only.
    o_ref[...] = jnp.maximum(acc, 0.0).astype(o_ref.dtype)


def _choose_tiling(H, W, target_cols, N, min_blocks=4):
    """Pick TQ = input rows per grid block.

    Hard constraint: (TQ*W) % 128 == 0 (lane-dense blocks) or TQ == H (full extent).
    Preferences (in order): enough total blocks to feed two v7x TensorCores,
    stay within the tile budget, avoid ragged-H padding, then the biggest tile.
    """
    lane_q = 128 // math.gcd(W, 128)          # smallest TQ with (TQ*W) % 128 == 0
    cands = {H}                               # full-extent single block is always legal
    lim = max(target_cols, lane_q * W)
    t = lane_q
    while t < H and t * W <= lim:
        cands.add(t)
        t += lane_q

    def badness(tq):
        nqb = pl.cdiv(H, tq)
        return (max(0, min_blocks - N * nqb),         # keep both v7x TCs busy
                max(0, tq * W - target_cols),         # stay within tile budget
                nqb * tq - H,                         # avoid ragged-H padding
                -(tq * W))                            # then: biggest tile

    TQ = min(sorted(cands), key=badness)
    nQB = pl.cdiv(H, TQ)
    return TQ, nQB, nQB * TQ


def conv2dt_forward(x_nchw, w, b, gamma, beta, rmean, rvar, eps=1e-5,
                    target_cols=8192, interleave_dtype=jnp.bfloat16):
    N, Cin, H, W = x_nchw.shape
    Cin_w, Cout, KH_, KW = w.shape
    assert Cin_w == Cin and KH_ == KH and KW == 1

    # ---- tiling along H (the only strided axis; kW == 1) ---------------------
    TQ, nQB, Hp = _choose_tiling(H, W, target_cols, N)
    TQW = TQ * W

    x = x_nchw.astype(jnp.float32)            # keep activations f32: casting them
    if Hp != H:                               # in the wrapper would cost an extra pass
        # TODO(synk): replace with in-kernel masking of the ragged tail.
        x = jnp.pad(x, ((0, 0), (0, 0), (0, Hp - H), (0, 0)))
    x3 = x.reshape(N, Cin, Hp * W)            # free view of NCHW

    # ---- halo: smallest lane-aligned window whose first W lanes are the next
    #            block's first input row (keeps input HBM traffic at ~1x). ------
    halo_w = None
    if TQW % 128 == 0:
        cand = 128 * pl.cdiv(W, 128)
        if TQW % cand == 0:
            halo_w = cand
    if halo_w is None:
        halo_w = TQW                          # fall back: whole next block (still legal)
    n_halo_blocks = (Hp * W) // halo_w
    halo_map = lambda n, qb: (n, 0, jnp.minimum((qb + 1) * (TQW // halo_w),
                                                n_halo_blocks - 1))

    # ---- weight slabs (phase-stacked, BN scale folded, K fused to 2*Cin) ------
    # Transposed conv along H decomposed per output phase p = oh mod 4:
    #   y[4q+p] = x[q] @ W[kh=3+p]  +  (p>0 ? x[q+1] @ W[kh=p-1] : 0)
    w_h = w[:, :, :, 0].astype(jnp.float32)                             # (Cin, Cout, KH)
    wa_p = jnp.stack([w_h[:, :, 3 + p] for p in range(4)], axis=-1)     # (Cin, Cout, 4)
    wb_p = jnp.stack([jnp.zeros_like(w_h[:, :, 0])] +
                     [w_h[:, :, p - 1] for p in range(1, 4)], axis=-1)  # (Cin, Cout, 4)

    scale_c = (gamma / jnp.sqrt(rvar + eps)).astype(jnp.float32)        # (Cout,)
    shift_c = (beta - rmean * scale_c + b * scale_c).astype(jnp.float32)

    # rows ordered (cout-major, phase-minor): row = 4*cout + p
    WA = (jnp.transpose(wa_p, (1, 2, 0)) * scale_c[:, None, None]).reshape(4 * Cout, Cin)
    WB = (jnp.transpose(wb_p, (1, 2, 0)) * scale_c[:, None, None]).reshape(4 * Cout, Cin)
    WK = jnp.concatenate([WA, WB], axis=1)                              # (4*Cout, 2*Cin)
    shift = jnp.repeat(shift_c, 4)[:, None]                             # (4*Cout, 1)

    kernel = partial(_conv_t_kernel, w_len=W, tqw=TQW)
    out = pl.pallas_call(
        kernel,
        out_shape=jax.ShapeDtypeStruct((N, 4 * Cout, Hp * W), interleave_dtype),
        grid=(N, nQB),
        in_specs=[
            pl.BlockSpec((None, Cin, TQW), lambda n, qb: (n, 0, qb)),
            pl.BlockSpec((None, Cin, halo_w), halo_map),
            pl.BlockSpec((4 * Cout, 2 * Cin), lambda n, qb: (0, 0)),
            pl.BlockSpec((4 * Cout, 1), lambda n, qb: (0, 0)),
        ],
        out_specs=pl.BlockSpec((None, 4 * Cout, TQW), lambda n, qb: (n, 0, qb)),
        compiler_params=pltpu.CompilerParams(
            dimension_semantics=("parallel", "parallel"),
            vmem_limit_bytes=64 * 1024 * 1024),
    )(x3, x3, WK, shift)

    # Phase interleave to NCHW: out[n, 4c+p, q*W+w] -> y[n, c, 4q+p, w].
    # One XLA copy over the output; the bf16 intermediate halves its read side
    # and the f32 cast fuses into the same pass.
    y = out.reshape(N, Cout, 4, Hp, W)
    y = jnp.transpose(y, (0, 1, 3, 2, 4)).astype(jnp.float32)
    y = y.reshape(N, Cout, 4 * Hp, W)
    if Hp != H:
        y = y[:, :, :4 * H, :]
    return y


def _reference_forward(x, w, b, gamma, beta, rmean, rvar, eps=1e-5):
    """Pure-JAX reference: definitional ConvTranspose2d (scatter expressed as an
    einsum against an indicator tensor) + BatchNorm(eval) + ReLU."""
    N, Cin, H, W = x.shape
    _, Cout, KHk, KWk = w.shape
    assert KWk == 1
    Hout = (H - 1) * STRIDE_H - 2 * PAD_H + KHk + OUT_PAD_H           # == 4*H here
    oh = jnp.arange(Hout)[:, None, None]
    ih = jnp.arange(H)[None, :, None]
    kh = jnp.arange(KHk)[None, None, :]
    T = (oh == ih * STRIDE_H - PAD_H + kh).astype(jnp.float32)        # (Hout, H, KH)
    hi = jax.lax.Precision.HIGHEST
    xt = jnp.einsum('nchw,Ohk->ncOkw', x.astype(jnp.float32), T, precision=hi)
    y = jnp.einsum('ncOkw,cok->noOw', xt, w[:, :, :, 0].astype(jnp.float32),
                   precision=hi)
    y = y + b[None, :, None, None]
    y = (y - rmean[None, :, None, None]) / jnp.sqrt(rvar[None, :, None, None] + eps)
    y = y * gamma[None, :, None, None] + beta[None, :, None, None]
    return jnp.maximum(y, 0.0)


def _run_case(name, N, H, W, *, target_cols=8192, interleave_dtype=jnp.bfloat16,
              atol=2e-2, rtol=2e-2, seed=0):
    nin, nout = 8, 11
    key = jax.random.PRNGKey(seed)
    k_x, k_w, k_b, k_g, k_be, k_rm, k_rv = jax.random.split(key, 7)

    x = jax.random.normal(k_x, (N, nin, H, W), jnp.float32)
    # ConvTranspose2d weight shape: (in_channels, out_channels, kH, kW)
    w = 0.1 * jax.random.normal(k_w, (nin, nout, KH, 1), jnp.float32)
    b = 0.1 * jax.random.normal(k_b, (nout,), jnp.float32)
    gamma = 1.0 + 0.1 * jax.random.normal(k_g, (nout,), jnp.float32)
    beta = 0.1 * jax.random.normal(k_be, (nout,), jnp.float32)
    rmean = 0.1 * jax.random.normal(k_rm, (nout,), jnp.float32)
    rvar = jnp.abs(1.0 + 0.1 * jax.random.normal(k_rv, (nout,), jnp.float32))

    fwd = jax.jit(partial(conv2dt_forward, target_cols=target_cols,
                          interleave_dtype=interleave_dtype))
    out = jax.block_until_ready(fwd(x, w, b, gamma, beta, rmean, rvar))

    ref = _reference_forward(x, w, b, gamma, beta, rmean, rvar)
    assert out.shape == (N, nout, 4 * H, W), (name, out.shape)
    max_err = float(jnp.max(jnp.abs(out - ref)))
    assert jnp.allclose(out, ref, atol=atol, rtol=rtol), (name, max_err)
    return max_err


if __name__ == "__main__":
    # 1) Small primary shape, f32 end-to-end (tight check): grid (2, 2).
    _run_case("small_f32", N=2, H=16, W=16,
              interleave_dtype=jnp.float32, atol=5e-4, rtol=5e-4)
    # 2) Multi-block + halo + is_last zeroing + bf16 intermediate (default perf path).
    _run_case("multiblock_bf16", N=2, H=512, W=16,
              interleave_dtype=jnp.bfloat16, atol=2e-2, rtol=2e-2)
    # 3) Ragged H (padding path) + W=48 halo window + many blocks per core.
    _run_case("ragged_w48_f32", N=1, H=90, W=48, target_cols=512,
              interleave_dtype=jnp.float32, atol=5e-4, rtol=5e-4)
    print("KERNEL_OK")
</pallas_src>

<mosaic_0001>
module attributes {stable_mosaic.version = 11 : i64} {
  func.func @_conv_t_kernel(%arg0: i32, %arg1: i32, %arg2: memref<1x8x128xf32, #tpu.memory_space<vmem>>, %arg3: memref<1x8x128xf32, #tpu.memory_space<vmem>>, %arg4: memref<44x16xf32, #tpu.memory_space<vmem>>, %arg5: memref<44x1xf32, #tpu.memory_space<vmem>>, %arg6: memref<1x44x128xf32, #tpu.memory_space<vmem>>) attributes {dimension_semantics = [#tpu.dimension_semantics<parallel>, #tpu.dimension_semantics<parallel>], iteration_bounds = array<i64: 2, 2>, scalar_prefetch = 0 : i64, scratch_operands = 0 : i64, tpu.core_type = #tpu.core_type<tc>, window_params = [{transform_indices = @transform_0, window_bounds = array<i64: 1, 8, 128>}, {transform_indices = @transform_1, window_bounds = array<i64: 1, 8, 128>}, {pipeline_mode = #tpu.pipeline_mode<synchronous>, transform_indices = @transform_2, window_bounds = array<i64: 44, 16>}, {pipeline_mode = #tpu.pipeline_mode<synchronous>, transform_indices = @transform_3, window_bounds = array<i64: 44, 1>}, {transform_indices = @transform_4, window_bounds = array<i64: 1, 44, 128>}]} {
    %c1_i32 = arith.constant 1 : i32
    %0 = arith.cmpi eq, %arg1, %c1_i32 : i32
    %c0 = arith.constant 0 : index
    %c0_0 = arith.constant 0 : index
    %c0_1 = arith.constant 0 : index
    %1 = vector.load %arg2[%c0, %c0_0, %c0_1] : memref<1x8x128xf32, #tpu.memory_space<vmem>>, vector<1x8x128xf32>
    %2 = vector.shape_cast %1 : vector<1x8x128xf32> to vector<8x128xf32>
    %c0_2 = arith.constant 0 : index
    %c0_3 = arith.constant 0 : index
    %c0_4 = arith.constant 0 : index
    %3 = vector.load %arg3[%c0_2, %c0_3, %c0_4] : memref<1x8x128xf32, #tpu.memory_space<vmem>>, vector<1x8x16xf32>
    %4 = vector.shape_cast %3 : vector<1x8x16xf32> to vector<8x16xf32>
    %cst = arith.constant 0.000000e+00 : f32
    %5 = vector.broadcast %cst : f32 to vector<8x16xf32>
    %6 = arith.select %0, %5, %4 : vector<8x16xf32>
    %7 = vector.extract_strided_slice %2 {offsets = [0, 16], sizes = [8, 112], strides = [1, 1]} : vector<8x128xf32> to vector<8x112xf32>
    %8 = tpu.concatenate %7, %6 in 1 : vector<8x112xf32>, vector<8x16xf32> -> vector<8x128xf32>
    %9 = tpu.concatenate %2, %8 in 0 : vector<8x128xf32>, vector<8x128xf32> -> vector<16x128xf32>
    %c0_5 = arith.constant 0 : index
    %c0_6 = arith.constant 0 : index
    %10 = vector.load %arg4[%c0_5, %c0_6] : memref<44x16xf32, #tpu.memory_space<vmem>>, vector<44x16xf32>
    %cst_7 = arith.constant dense<0.000000e+00> : vector<44x128xf32>
    %11 = tpu.matmul %10, %9, %cst_7 {dimension_numbers = #tpu.dot_dimension_numbers<[1], [0], [0], [1], [0, 0, 1, 1], [], []>} : vector<44x16xf32>, vector<16x128xf32>, vector<44x128xf32> -> vector<44x128xf32>
    %c0_8 = arith.constant 0 : index
    %c0_9 = arith.constant 0 : index
    %12 = vector.load %arg5[%c0_8, %c0_9] : memref<44x1xf32, #tpu.memory_space<vmem>>, vector<44x1xf32>
    %13 = vector.broadcast %12 : vector<44x1xf32> to vector<44x128xf32>
    %14 = arith.addf %11, %13 : vector<44x128xf32>
    %cst_10 = arith.constant 0.000000e+00 : f32
    %15 = vector.broadcast %cst_10 : f32 to vector<44x128xf32>
    %16 = arith.maximumf %14, %15 : vector<44x128xf32>
    %c0_11 = arith.constant 0 : index
    %c0_12 = arith.constant 0 : index
    %c0_13 = arith.constant 0 : index
    %17 = vector.load %arg6[%c0_11, %c0_12, %c0_13] : memref<1x44x128xf32, #tpu.memory_space<vmem>>, vector<1x44x128xf32>
    %18 = vector.shape_cast %17 : vector<1x44x128xf32> to vector<44x128xf32>
    %19 = vector.shape_cast %16 : vector<44x128xf32> to vector<1x44x128xf32>
    tpu.vector_store %arg6[%c0_11, %c0_12, %c0_13], %19 {strides = array<i32>} : memref<1x44x128xf32, #tpu.memory_space<vmem>>, vector<1x44x128xf32>,
    return
  }
  func.func @transform_0(%arg0: i32, %arg1: i32) -> (i32, i32, i32) {
    %c0_i32 = arith.constant 0 : i32
    %c0_i32_0 = arith.constant 0 : i32
    return %arg0, %c0_i32, %arg1 : i32, i32, i32
  }
  func.func @transform_1(%arg0: i32, %arg1: i32) -> (i32, i32, i32) {
    %c1_i32 = arith.constant 1 : i32
    %0 = arith.addi %arg1, %c1_i32 : i32
    %c1_i32_0 = arith.constant 1 : i32
    %1 = arith.muli %0, %c1_i32_0 : i32
    %c1_i32_1 = arith.constant 1 : i32
    %2 = arith.minsi %1, %c1_i32_1 : i32
    %c0_i32 = arith.constant 0 : i32
    %c0_i32_2 = arith.constant 0 : i32
    return %arg0, %c0_i32, %2 : i32, i32, i32
  }
  func.func @transform_2(%arg0: i32, %arg1: i32) -> (i32, i32) {
    %c0_i32 = arith.constant 0 : i32
    %c0_i32_0 = arith.constant 0 : i32
    %c0_i32_1 = arith.constant 0 : i32
    return %c0_i32, %c0_i32_0 : i32, i32
  }
  func.func @transform_3(%arg0: i32, %arg1: i32) -> (i32, i32) {
    %c0_i32 = arith.constant 0 : i32
    %c0_i32_0 = arith.constant 0 : i32
    %c0_i32_1 = arith.constant 0 : i32
    return %c0_i32, %c0_i32_0 : i32, i32
  }
  func.func @transform_4(%arg0: i32, %arg1: i32) -> (i32, i32, i32) {
    %c0_i32 = arith.constant 0 : i32
    %c0_i32_0 = arith.constant 0 : i32
    return %arg0, %c0_i32, %arg1 : i32, i32, i32
  }
}

</mosaic_0001>

<bundles_post_ra>
// kernel: conv2dt_forward.1
= control target key start
LH: loop header
LB: loop body
LE: loop exit
PB: predicated region body
PF: predicated region fallthrough
CT: control target
= control target key end

     0   :  { %s1517_s0 = inlined_call_operand.hbm [shape: f32[2,8,256], index: 0, kind: input, shape index: {}, may-alias: {0,1}]   ;;  %s1518_s1 = inlined_call_operand.hbm [shape: f32[2,8,256], index: 1, kind: input, shape index: {}, may-alias: {0,1}]   ;;  %s1519_s2 = inlined_call_operand.hbm [shape: f32[44,16], index: 2, kind: input, shape index: {}]   ;;  %s1520_s3 = inlined_call_operand.hbm [shape: f32[44,1], index: 3, kind: input, shape index: {}]   ;;  %s1521_s4 = inlined_call_operand.hbm [shape: f32[2,44,256], index: 4, kind: output, shape index: {}]  }
   0x1   :  { %1531 = sst [smem:[#allocation19_spill]] %s1519_s2 }
   0x2   :  { %1532 = sst [smem:[#allocation20_spill]] %s1520_s3 }
   0x3   :  { %1533 = sst [smem:[#allocation21_spill]] %s1521_s4 }
   0x4   :  { %9 = vsyncpa [#allocation3], 0 }
   0x5   :  { %11 = vsyncpa [#allocation3 + $0x1], 0 }
   0x6   :  { %12 = vsyncpa [#allocation6], 0 }
   0x7   :  { %14 = vsyncpa [#allocation6 + $0x1], 0 }
   0x8   :  { %15 = vsyncpa [#allocation9], 0 }
   0x9   :  { %16 = vsyncpa [#allocation4], 0 }
   0xa   :  { %18 = vsyncpa [#allocation4 + $0x1], 0  ;;  %s1137_s15 = smov 0   ;;  %s1139_s16 = smov 0  }
   0xb   :  { %s1141_s17 = smov 0   ;;  %s1143_s18 = smov 0  }
   0xc   :  { %s1145_s19 = smov 0   ;;  %s1147_s20 = smov 0  }
   0xd   :  { %s1149_s21 = smov 0   ;;  %s1151_s22 = smov 0  }
   0xe   :  { %s1153_s23 = smov 0   ;;  %s1155_s24 = smov 0  }
   0xf   :  { %s1157_s25 = smov 0  }
  0x10 LB: > { %s1193_s26 = sadd.s32 4294967295, %s1098_s25   ;;  %p647_p0 = scmp.ge.s32.totalorder %s1098_s25, 1  ;;  %s1098_s25 = sphi %s1157_s25, %s24_s25   ;;  %s1094_s24 = sphi %s1155_s24, %s1574_s24   ;;  %s1090_s23 = sphi %s1153_s23, %s1573_s23   ;;  %s1086_s22 = sphi %s1151_s22, %s1572_s22   ;;  %s1082_s21 = sphi %s1149_s21, %s1571_s21   ;;  %s1078_s20 = sphi %s1147_s20, %s1570_s20   ;;  %s1074_s19 = sphi %s1145_s19, %s1569_s19   ;;  %s1070_s18 = sphi %s1143_s18, %s1568_s18   ;;  %s1066_s17 = sphi %s1141_s17, %s1567_s17   ;;  %s1062_s16 = sphi %s1139_s16, %s1566_s16   ;;  %s1058_s15 = sphi %s1137_s15, %s1565_s15  }
  0x11   : > { %p1522_p1 = scmp.eq.s32.totalorder %s1193_s26, 0  ;;  %p173_p2 = scmp.lt.s32.totalorder %s1098_s25, 5 }
  0x12   : > { %s1100_s28 = smov [#allocation7]   ;;  %s1101_s5 = smov [#allocation8]  }
  0x13   : > { %p1198_p3 = pnand %p647_p0, %p173_p2  ;;  %s185_s29 = sshll.u32 %s1100_s28, 4  ;;  %s186_s29 = int_to_ptr.vmem [resolvable:$true] %s185_s29 }
  0x14   : > { %s198_s6 = sshll.u32 %s1101_s5, 4  ;;  %s1536_s2 = sld [smem:[#allocation19_spill]]  ;;  %s1210_s6 = int_to_ptr.vmem [resolvable:$true] %s198_s6 }
  0x15   : > { %s1534_s27 = scalar_select %p1198_p3, 1, 0 }
  0x16   : > { %p714_p4 = pneg %p1198_p3 }
  0x18   : > { %p1206_p5 = pnand %p714_p4, %p1522_p1 }
  0x1a   : > { %s845_s9 = scalar_lea.hbm %s1536_s2, 768  ;;  %p847_p7 = pneg %p1206_p5 }
  0x1b   : > { %p846_p6 = scmp.ne.s32.totalorder %s1536_s2, %s845_s9  ;;  %p852_p10 = scmp.lt.u32.totalorder %s845_s9, %s1536_s2 }
  0x1d   : > { %p848_p8 = pnand %p847_p7, %p846_p6 }
  0x1f   : > { %p849_p9 = pneg %p848_p8 }
  0x21   : > { %p854_p11 = pnand %p852_p10, %p849_p9 }
  0x23   : > { %857 = shalt.err (!%p854_p11)
}
  0x24   : > { %s858_s14 = scalar_lea.vmem %s186_s29, 768  ;;  %p866_p2 = scmp.lt.s32.totalorder %s186_s29, %s186_s29 }
  0x25   : > { %p859_p12 = scmp.ne.s32.totalorder %s186_s29, %s858_s14  ;;  %p867_p4 = scmp.lt.s32.totalorder %s858_s14, %s858_s14 }
  0x27   : > { %p861_p13 = pnand %p859_p12, %p847_p7  ;;  %p868_p1 = por %p867_p4, %p866_p2 }
  0x29   : > { %p862_p0 = pneg %p861_p13 }
  0x2b   : > { %p869_p3 = pnand %p868_p1, %p862_p0 }
  0x2d   : > { %872 = shalt.err (!%p869_p3)
}
  0x2e   : > { %s1102_s28 = smov 128   ;;  %s1103_s5 = smov 8  }
  0x2f   : > { %717 = dma.hbm_to_vmem [thread:$0]  (!%p1206_p5), %s1536_s2, 768, %s186_s29, [#allocation6], %s1102_s28, %s1102_s28, %s1103_s5  }
  0x30   : > { %s1537_s3 = sld [smem:[#allocation20_spill]] }
  0x36   : > { %s873_s11 = scalar_lea.hbm %s1537_s3, 768 }
  0x37   : > { %p874_p6 = scmp.ne.s32.totalorder %s1537_s3, %s873_s11  ;;  %p880_p8 = scmp.lt.u32.totalorder %s873_s11, %s1537_s3 }
  0x39   : > { %p876_p1 = pnand %p874_p6, %p847_p7 }
  0x3b   : > { %p877_p3 = pneg %p876_p1 }
  0x3d   : > { %p882_p9 = pnand %p880_p8, %p877_p3 }
  0x3f   : > { %885 = shalt.err (!%p882_p9)
}
  0x40   : > { %s886_s29 = scalar_lea.vmem %s1210_s6, 768  ;;  %p894_p13 = scmp.lt.s32.totalorder %s1210_s6, %s1210_s6 }
  0x41   : > { %p887_p10 = scmp.ne.s32.totalorder %s1210_s6, %s886_s29  ;;  %p895_p0 = scmp.lt.s32.totalorder %s886_s29, %s886_s29 }
  0x43   : > { %p889_p11 = pnand %p887_p10, %p847_p7  ;;  %p896_p2 = por %p895_p0, %p894_p13 }
  0x45   : > { %p890_p12 = pneg %p889_p11 }
  0x47   : > { %p897_p4 = pnand %p896_p2, %p890_p12 }
  0x49   : > { %900 = shalt.err (!%p897_p4)
}
  0x4a   : > { %720 = dma.hbm_to_vmem [thread:$0]  (!%p1206_p5), %s1537_s3, 768, %s1210_s6, [#allocation9], %s1102_s28, %s1102_s28, %s1103_s5  }
  0x4b   : > { %s646_s30 = sadd.s32 4294967294, %s1098_s25   ;;  %s33_s8 = sadd.s32 1, %s1090_s23 }
  0x4c   : > { %p34_p7 = scmp.ge.s32.totalorder %s33_s8, 2  ;;  %s36_s9 = sadd.s32 1, %s1094_s24 }
  0x4d   : > { %s45_s10 = sadd.s32 1, %s1078_s20  ;;  %p52_p6 = scmp.ne.s32.totalorder %s1078_s20, %s1074_s19 }
  0x4e   : > { %s1576_s8 = smov (%p34_p7, %s33_s8), 0  ;;  %s1578_s9 = smov (!%p34_p7, %s36_s9), %s1094_s24 }
  0x4f   : > { %1538 = sst [smem:[#allocation16_spill]] %s1576_s8  ;;  %s41_s11 = ssub.s32 %s1090_s23, %s1576_s8 }
  0x50   : > { %p1528_p1 = scmp.eq.s32.totalorder %s1098_s25, 0  ;;  %p38_p5 = scmp.ge.s32.totalorder %s1578_s9, 2 }
  0x51   : > { %p58_p3 = scmp.ne.s32.totalorder %s1074_s19, %s1070_s18  ;;  %p1541_p9 = scmp.eq.s32.totalorder %s1193_s26, 0 }
  0x52   : > { %p1278_p8 = por %p1528_p1, %p52_p6  ;;  %s1580_s9 = smov (%p38_p5, %s1578_s9), 0 }
  0x53   : > { %1540 = sst [smem:[#allocation17_spill]] %s1580_s9  ;;  %p1286_p10 = por %p1541_p9, %p58_p3 }
  0x54   : > { %s1292_s5 = ssub.s32 %s1094_s24, %s1580_s9  ;;  %p160_p11 = scmp.eq.s32.totalorder %s1193_s26, 3 }
  0x55   : > { %s42_s12 = sor.u32 %s41_s11, %s1292_s5  ;;  %p166_p13 = scmp.eq.s32.totalorder %s646_s30, 3 }
  0x56   : > { %p43_p12 = scmp.eq.s32.totalorder %s42_s12, 0  ;;  %p1302_p0 = por %p160_p11, %p52_p6 }
  0x57   : > { %p1306_p2 = por %p166_p13, %p58_p3  ;;  %p1527_p4 = scmp.lt.s32.totalorder %s1098_s25, 4 }
  0x58   : > { %s1297_s13 = scalar_select %p43_p12, %s1078_s20, %s45_s10  }
  0x59   : > { %s1544_s14 = scalar_select %p1302_p0, 1, 0 }
  0x5a   : > { %1543 = sst [smem:[#allocation18_spill]] %s1297_s13  ;;  %s212_s4 = sand.u32 1, %s1078_s20  }
  0x5b   : > { %s1545_s29 = scalar_select %p1306_p2, 1, 0 }
  0x5c   : > { %s651_s7 = sshll.u32 %s212_s4, 3  ;;  %s652_s11 = sshll.u32 %s1094_s24, 1 }
  0x5d   : > { %s221_s12 = sadd.s32 %s1090_s23, %s652_s11  ;;  %s216_s3 = scalar_lea.vmem [#allocation2], %s651_s7 }
  0x5e   : > { %s653_s2 = sshll.u32 %s221_s12, 7  ;;  %s225_s30 = sshll.u32 %s216_s3, 4  ;;  %s1320_s30 = int_to_ptr.vmem [resolvable:$true] %s225_s30 }
  0x5f   : > { %s1318_s8 = scalar_lea.hbm %s1517_s0, %s653_s2  ;;  %p1326_p6 = pnand %p1527_p4, %p1278_p8 }
  0x60   : > { %s213_s3 = scalar_lea.sflag [#allocation3], %s212_s4  ;;  %s901_s7 = scalar_lea.hbm %s1318_s8, 128 }
  0x61   : > { %p902_p5 = scmp.ne.s32.totalorder %s1318_s8, %s901_s7  ;;  %p903_p3 = pneg %p1326_p6 }
  0x62   : > { %s906_s6 = scalar_lea.hbm %s1517_s0, 512  ;;  %p907_p8 = scmp.lt.u32.totalorder %s1318_s8, %s1517_s0 }
  0x63   : > { %p904_p9 = pnand %p903_p3, %p902_p5  ;;  %p908_p12 = scmp.lt.u32.totalorder %s906_s6, %s901_s7 }
  0x64   : > { %p910_p4 = scmp.lt.u32.totalorder %s901_s7, %s1318_s8 }
  0x65   : > { %p905_p11 = pneg %p904_p9  ;;  %p909_p13 = por %p908_p12, %p907_p8 }
  0x67   : > { %p911_p1 = por %p910_p4, %p909_p13 }
  0x69   : > { %p912_p7 = pnand %p911_p1, %p905_p11 }
  0x6b   : > { %915 = shalt.err (!%p912_p7)
}
  0x6c   : > { %s916_s4 = scalar_lea.vmem %s1320_s30, 128  ;;  %s1104_s10 = smov [#allocation2]  }
  0x6d   : > { %p917_p5 = scmp.ne.s32.totalorder %s1320_s30, %s916_s4  ;;  %s921_s2 = sshll.u32 %s1104_s10, 4  ;;  %s922_s2 = int_to_ptr.vmem [resolvable:$false] %s921_s2 }
  0x6e   : > { %s923_s9 = scalar_lea.vmem %s922_s2, 256  ;;  %p924_p0 = scmp.lt.s32.totalorder %s1320_s30, %s922_s2 }
  0x6f   : > { %p919_p9 = pnand %p917_p5, %p903_p3  ;;  %p925_p8 = scmp.lt.s32.totalorder %s923_s9, %s916_s4 }
  0x71   : > { %p920_p2 = pneg %p919_p9  ;;  %p926_p12 = por %p925_p8, %p924_p0 }
  0x73   : > { %p927_p4 = pnand %p926_p12, %p920_p2 }
  0x75   : > { %930 = shalt.err (!%p927_p4)
}
  0x76   : > { %724 = dma.hbm_to_vmem [thread:$0]  (!%p1326_p6), %s1318_s8, 128, %s1320_s30, %s213_s3  }
  0x77   : > { %s79_s7 = sadd.s32 1, %s1066_s17  ;;  %p1547_p1 = scmp.eq.s32.totalorder %s1292_s5, 0 }
  0x78   : > { %p86_p0 = scmp.ne.s32.totalorder %s1066_s17, %s1062_s16  ;;  %p92_p2 = scmp.ne.s32.totalorder %s1062_s16, %s1058_s15 }
  0x79   : > { %s1359_s6 = scalar_select %p1547_p1, %s1066_s17, %s79_s7  }
  0x7a   : > { %s232_s13 = sand.u32 1, %s1098_s25   ;;  %s234_s11 = sand.u32 1, %s1066_s17  }
  0x7b   : > { %p1548_p7 = scmp.eq.s32.totalorder %s1098_s25, 0  ;;  %p1549_p11 = scmp.eq.s32.totalorder %s1193_s26, 0 }
  0x7c   : > { %s654_s4 = sshll.u32 %s234_s11, 3  ;;  %s1055_s10 = sshll.u32 %s1094_s24, 8 }
  0x7d   : > { %p88_p3 = por %p86_p0, %p1548_p7  ;;  %p1371_p13 = por %p92_p2, %p1549_p11 }
  0x7e   : > { %s1054_s2 = sadd.s32 128, %s1055_s10  ;;  %s236_s15 = scalar_lea.vmem [#allocation5], %s654_s4 }
  0x7f   : > { %s1550_s12 = scalar_select %p1371_p13, 1, 0 }
  0x80   : > { %s1379_s5 = scalar_lea.hbm %s1518_s1, %s1054_s2  ;;  %s248_s3 = sshll.u32 %s236_s15, 4  ;;  %s1381_s3 = int_to_ptr.vmem [resolvable:$true] %s248_s3 }
  0x81   : > { %p1551_p6 = scmp.lt.s32.totalorder %s1098_s25, 4  ;;  %s233_s7 = scalar_lea.sflag [#allocation6], %s232_s13 }
  0x82   : > { %s931_s11 = scalar_lea.hbm %s1379_s5, 128  ;;  %s936_s2 = scalar_lea.hbm %s1518_s1, 512 }
  0x83   : > { %p1385_p5 = pnand %p1551_p6, %p88_p3  ;;  %p932_p9 = scmp.ne.s32.totalorder %s1379_s5, %s931_s11 }
  0x84   : > { %p937_p1 = scmp.lt.u32.totalorder %s1379_s5, %s1518_s1  ;;  %p938_p0 = scmp.lt.u32.totalorder %s936_s2, %s931_s11 }
  0x85   : > { %p933_p8 = pneg %p1385_p5  ;;  %p940_p7 = scmp.lt.u32.totalorder %s931_s11, %s1379_s5 }
  0x86   : > { %p939_p2 = por %p938_p0, %p937_p1 }
  0x87   : > { %p934_p12 = pnand %p933_p8, %p932_p9 }
  0x88   : > { %p941_p3 = por %p940_p7, %p939_p2 }
  0x89   : > { %p935_p4 = pneg %p934_p12 }
  0x8b   : > { %p942_p11 = pnand %p941_p3, %p935_p4 }
  0x8d   : > { %945 = shalt.err (!%p942_p11)
}
  0x8e   : > { %s946_s13 = scalar_lea.vmem %s1381_s3, 128  ;;  %s1105_s15 = smov [#allocation5]  }
  0x8f   : > { %p947_p6 = scmp.ne.s32.totalorder %s1381_s3, %s946_s13  ;;  %s951_s4 = sshll.u32 %s1105_s15, 4  ;;  %s952_s4 = int_to_ptr.vmem [resolvable:$false] %s951_s4 }
  0x90   : > { %s953_s10 = scalar_lea.vmem %s952_s4, 256  ;;  %p954_p13 = scmp.lt.s32.totalorder %s1381_s3, %s952_s4 }
  0x91   : > { %p949_p9 = pnand %p947_p6, %p933_p8  ;;  %p955_p1 = scmp.lt.s32.totalorder %s953_s10, %s946_s13 }
  0x93   : > { %p950_p12 = pneg %p949_p9  ;;  %p956_p0 = por %p955_p1, %p954_p13 }
  0x95   : > { %p957_p2 = pnand %p956_p0, %p950_p12 }
  0x97   : > { %960 = shalt.err (!%p957_p2)
}
  0x98   : > { %727 = dma.hbm_to_vmem [thread:$0]  (!%p1385_p5), %s1379_s5, 128, %s1381_s3, %s233_s7  }
  0x99   : > { %p1553_p4 = scmp.ne.s32.totalorder %s1534_s27, 0 }
  0x9a   : > { %s1417_s11 = sand.u32 (!%p1553_p4), 1, %s1074_s19  }
  0x9b   : > { %257 = sbr.rel (%p1553_p4) target bundleno = 542 (0x21e), region = 36  ;;  %s658_s2 = sshll.u32 (!%p1553_p4), %s1417_s11, 3 }
  0x9c   : > { %s260_s8 = scalar_lea.sflag (!%p1553_p4), [#allocation3], %s1417_s11  ;;  %s263_s30 = scalar_lea.vmem (!%p1553_p4), [#allocation2], %s658_s2 }
  0xa2   : > { %1034 = dma.done.wait (%p1286_p10), %s260_s8, 128  }
  0xa3   : > { %1036 = vsyncadd (%p1286_p10), %s260_s8, 4294967168  ;;  %s268_s5 = sand.u32 1, %s1193_s26   ;;  %s270_s27 = sand.u32 1, %s1062_s16  }
  0xa4   : > { %s659_s3 = sshll.u32 %s270_s27, 3  ;;  %s269_s9 = scalar_lea.sflag [#allocation6], %s268_s5 }
  0xa5   : > { %s272_s7 = scalar_lea.vmem [#allocation5], %s659_s3  ;;  %p1554_p13 = scmp.ne.s32.totalorder %s1550_s12, 0 }
  0xa7   : > { %1038 = dma.done.wait (%p1554_p13), %s269_s9, 128  }
  0xa8   : > { %1040 = vsyncadd (%p1554_p13), %s269_s9, 4294967168  ;;  %p1555_p5 = scmp.eq.s32.totalorder %s1193_s26, 0 }
  0xaa   : > { %1042 = dma.done.wait (%p1555_p5), [#allocation6], 768   ;;  %p1556_p8 = pmov %p1555_p5 }
  0xab   : > { %p1557_p10 = pmov %p1555_p5 }
  0xac   : > { %1044 = vsyncadd (%p1556_p8), [#allocation6], 4294966528 }
  0xad   : > { %1046 = dma.done.wait (%p1557_p10), [#allocation9], 768   ;;  %p1558_p7 = pmov %p1555_p5 }
  0xae   : > { %p313_p3 = scmp.eq.s32.totalorder %s1082_s21, 1  ;;  %vm372_vm0 = vcmask 130048   ;;  %v314_v0 = vld [vmem:[%s263_s30] sm:$0xff]  ;;  %v332_v2 = vld [vmem:[#allocation7 + $0x10] sm:$0xff]  ;;  %s1106_s12 = smov 112   ;;  %v337_v5 = vld [vmem:[#allocation8 + $0x8] sm:$0xff] }
  0xaf   : > { %1048 = vsyncadd (%p1558_p7), [#allocation9], 4294966528  ;;  %v330_v1 = vld [vmem:[#allocation7] sm:$0xff]  ;;  %686 = vmatprep.mubr.msk.f32.mxu1 %vm372_vm0, %v332_v2  ;;  %v1107_v6 = vmov 0   ;;  %v336_v7 = vld [vmem:[#allocation8] sm:$0xff]  ;;  %vm328_vm1 = vcmask 916480  }
  0xb0   : > { %s843_s28 = scalar_select %p313_p3, 0, 255  ;;  %683 = vmatprep.mubr.msk.f32.mxu0 %vm372_vm0, %v330_v1  ;;  %841 = vset.pattern.permute.xlu1 %v1107_v6  ;;  %v338_v8 = vld [vmem:[#allocation8 + $0x10] sm:$0xff]  ;;  %v340_v9 = vld [vmem:[#allocation8 + $0x20] sm:$0xff]  ;;  %v339_v10 = vld [vmem:[#allocation8 + $0x18] sm:$0xff] }
  0xb1   : > { %840 = vset.pattern.permute.xlu0 %v1107_v6  ;;  %349 = vperm.xlu1 %841, %v337_v5   ;;  %v341_v11 = vld [vmem:[#allocation8 + $0x28] sm:$0xf]  ;;  %v331_v17 = vld [vmem:[#allocation7 + $0x8] sm:$0xff]  ;;  %v334_v19 = vld [vmem:[#allocation7 + $0x20] sm:$0xff]  ;;  %s699_s26 = smul.u32 12, %s1086_s22  ;;  %s1559_s8 = sld [smem:[#allocation21_spill]] }
  0xb2   : > { %v844_v3 = vld [vmem:[%s272_s7] sm:%s843_s28]  ;;  %v335_v20 = vld [vmem:[#allocation7 + $0x28] sm:$0xf]  ;;  %s698_s13 = smul.u32 48, %s1417_s11  ;;  %s499_s5 = scalar_lea.sflag [#allocation4], %s1417_s11 }
  0xb3   : > { %v835_v4 = vpack.i.bf16 %v844_v3, %v314_v0  ;;  %v333_v18 = vld [vmem:[#allocation7 + $0x18] sm:$0xff]  ;;  %s510_s15 = sadd.s32 %s1082_s21, %s699_s26  ;;  %p1560_p6 = scmp.ne.s32.totalorder %s1544_s14, 0 }
  0xb4   : > { %s309_s4 = scalar_lea.vmem [#allocation10], %s698_s13  ;;  %s668_s22 = sshll.u32 %s510_s15, 7 }
  0xb5   : > { %836 = vrot.lane.b32.xlu0 %v835_v4, %s1106_s12  ;;  %354 = vperm.xlu1 %841, %v338_v8   ;;  %s513_s10 = sshll.u32 %s309_s4, 4  ;;  %s1108_s3 = smov [#allocation10]   ;;  %s1449_s10 = int_to_ptr.vmem [resolvable:$true] %s513_s10 }
  0xb6   : > { %s961_s27 = scalar_lea.vmem %s1449_s10, 768  ;;  %s965_s9 = sshll.u32 %s1108_s3, 4  ;;  %s966_s9 = int_to_ptr.vmem [resolvable:$false] %s965_s9 }
  0xb7   : > { %s1454_s30 = scalar_lea.hbm %s1559_s8, %s668_s22  ;;  %p962_p11 = scmp.ne.s32.totalorder %s1449_s10, %s961_s27 }
  0xb8   : > { %s967_s7 = scalar_lea.vmem %s966_s9, 1536  ;;  %p968_p1 = scmp.lt.s32.totalorder %s1449_s10, %s966_s9 }
  0xb9   : > { %344 = vperm.xlu0 %840, %v336_v7   ;;  %359 = vperm.xlu1 %841, %v339_v10   ;;  %p963_p9 = pnand %p962_p11, %p1560_p6  ;;  %p969_p0 = scmp.lt.s32.totalorder %s967_s7, %s961_s27 }
  0xbb   : > { %p964_p12 = pneg %p963_p9  ;;  %p970_p2 = por %p969_p0, %p968_p1 }
  0xbd   : > { %364 = vperm.xlu0 %840, %v340_v9   ;;  %369 = vperm.xlu1 %841, %v341_v11   ;;  %p971_p4 = pnand %p970_p2, %p964_p12 }
 0x127   : > { %v837_v12 = vpop.permute.xlu0 %836 }
 0x128   : > { %v839_v13 = vunpack.i.h.bf16 %v837_v12  ;;  %v838_v14 = vunpack.i.l.bf16 %v837_v12 }
 0x12a   : > { %v329_v15 = vsel %vm328_vm1, %v838_v14, %v839_v13 }
 0x12b   : > { %v692_v16 = vpack.c.bf16 %v329_v15, %v314_v0 }
 0x12d   : > { %693 = vmatprep.subr.bf16.mxu0 %v692_v16  ;;  %696 = vmatprep.subr.bf16.mxu1 %v692_v16 }
 0x12e   : > { %695 = vmatpush3.bf16.msra.mxu0 %v692_v16  ;;  %697 = vmatpush3.bf16.msra.mxu1 %v692_v16 }
 0x130   : > { %v350_v21 = vpop.permute.xlu1 %349 }
 0x131   : > { %684 = vmatmul.mubr.msk.f32.vlgmr.msra.gmra.mrb[0].mxu0 %vm372_vm0, %v331_v17  ;;  %687 = vmatmul.mubr.msk.f32.vlgmr.msra.gmra.mrb[0].mxu1 %vm372_vm0, %v333_v18 }
 0x132   : > { %689 = vmatprep.mubr.msk.f32.mxu1 %vm372_vm0, %v334_v19 }
 0x134   : > { %v355_v22 = vpop.permute.xlu1 %354 }
 0x135   : > { %690 = vmatmul.mubr.msk.f32.gmra.mrb[2].mxu1 %vm372_vm0, %v335_v20 }
 0x138   : > { %v360_v23 = vpop.permute.xlu1 %359  ;;  %v345_v24 = vpop.permute.xlu0 %344 }
 0x13c   : > { %v370_v35 = vpop.permute.xlu1 %369  ;;  %v365_v39 = vpop.permute.xlu0 %364 }
 0x204   : > { %v685_v25 = vpop.f32.mrb[0].mxu0  ;;  %v688_v26 = vpop.f32.mrb[0].mxu1 }
 0x205   : > { %v463_v27 = vadd.f32 %v685_v25, %v350_v21  ;;  %v473_v28 = vadd.f32 %v688_v26, %v360_v23  ;;  %v457_v29 = vpop.f32.mrb[1].mxu0  ;;  %v467_v30 = vpop.f32.mrb[1].mxu1 }
 0x206   : > { %v458_v31 = vadd.f32 %v457_v29, %v345_v24  ;;  %v468_v32 = vadd.f32 %v467_v30, %v355_v22 }
 0x207   : > { %v487_v33 = vmax.f32 %v463_v27, 0.0  ;;  %v489_v34 = vmax.f32 %v473_v28, 0.0 }
 0x208   : > { %v486_v36 = vmax.f32 %v458_v31, 0.0  ;;  %v488_v37 = vmax.f32 %v468_v32, 0.0  ;;  %v691_v38 = vpop.f32.mrb[2].mxu1 }
 0x209   : > { %493 = vst [vmem:[%s309_s4 + $0x8] sm:$0xff] %v487_v33  ;;  %495 = vst [vmem:[%s309_s4 + $0x18] sm:$0xff] %v489_v34  ;;  %v483_v40 = vadd.f32 %v691_v38, %v370_v35  ;;  %v477_v41 = vpop.f32.mrb[3].mxu1 }
 0x20a   : > { %492 = vst [vmem:[%s309_s4] sm:$0xff] %v486_v36  ;;  %494 = vst [vmem:[%s309_s4 + $0x10] sm:$0xff] %v488_v37  ;;  %v478_v42 = vadd.f32 %v477_v41, %v365_v39 }
 0x20b   : > { %v491_v43 = vmax.f32 %v483_v40, 0.0 }
 0x20c   : > { %v490_v44 = vmax.f32 %v478_v42, 0.0 }
 0x20d   : > { %497 = vst [vmem:[%s309_s4 + $0x28] sm:$0xf] %v491_v43 }
 0x20e   : > { %496 = vst [vmem:[%s309_s4 + $0x20] sm:$0xff] %v490_v44 }
 0x20f   : > { %974 = shalt.err (!%p971_p4)
}
 0x210   : > { %s975_s28 = scalar_lea.hbm %s1454_s30, 768  ;;  %s979_s13 = scalar_lea.hbm %s1559_s8, 3072 }
 0x211   : > { %p976_p13 = scmp.ne.s32.totalorder %s1454_s30, %s975_s28  ;;  %p980_p10 = scmp.lt.u32.totalorder %s1454_s30, %s1559_s8 }
 0x212   : > { %p981_p7 = scmp.lt.u32.totalorder %s979_s13, %s975_s28  ;;  %p983_p11 = scmp.lt.u32.totalorder %s975_s28, %s1454_s30 }
 0x213   : > { %p977_p5 = pnand %p976_p13, %p1560_p6 }
 0x214   : > { %p982_p3 = por %p981_p7, %p980_p10 }
 0x215   : > { %p978_p8 = pneg %p977_p5 }
 0x216   : > { %p984_p9 = por %p983_p11, %p982_p3 }
 0x218   : > { %p985_p12 = pnand %p984_p9, %p978_p8 }
 0x21a   : > { %988 = shalt.err (!%p985_p12)
}
 0x21b   : > { %s1109_s22 = smov 128   ;;  %s1110_s21 = smov 256  }
 0x21c   : > { %s1111_s2 = smov 8  }
 0x21d   : > { %712 = dma.vmem_to_hbm [thread:$0]  (%p1560_p6), %s1449_s10, 768, %s1454_s30, %s499_s5, %s1109_s22, %s1110_s21, %s1111_s2  }
 0x21e PF: > { %p737_p1 = scmp.ge.s32.totalorder %s1098_s25, 2  ;;  %s528_s27 = sand.u32 1, %s1070_s18  }
 0x21f   : > { %p1561_p0 = scmp.ne.s32.totalorder %s1545_s29, 0  ;;  %s529_s3 = scalar_lea.sflag [#allocation4], %s528_s27 }
 0x221   : > { %p729_p2 = pnand %p737_p1, %p1561_p0 }
 0x223   : > { %1050 = dma.done.wait (!%p729_p2), %s529_s3, 768  }
 0x224   : > { %1052 = vsyncadd (!%p729_p2), %s529_s3, 4294966528  ;;  %s24_s25 = sadd.s32 1, %s1098_s25   ;;  %s1562_s14 = sld [smem:[#allocation18_spill]] }
 0x225   : > { %p21_p4 = scmp.ge.s32.totalorder %s24_s25, 6   ;;  %s1563_s11 = sld [smem:[#allocation16_spill]] }
 0x226   : > { %s1564_s10 = sld [smem:[#allocation17_spill]]  ;;  %s1565_s15 = smov %s1062_s16 }
 0x227   : > { %s1566_s16 = smov %s1066_s17  ;;  %s1567_s17 = smov %s1359_s6 }
 0x228   : > { %s1568_s18 = smov %s1074_s19  ;;  %s1569_s19 = smov %s1078_s20 }
 0x229   : > { %s1571_s21 = smov %s1090_s23  ;;  %s1572_s22 = smov %s1094_s24 }
 0x22a   : > { %s1570_s20 = smov %s1562_s14  ;;  %23 = sbr.rel (!%p21_p4) target bundleno = 16 (0x10), region = 102 }
 0x22b   : > { %s1573_s23 = smov %s1563_s11 }
 0x22c   : > { %s1574_s24 = smov %s1564_s10 }
 0x231   :  { %534 = vsyncpa [#allocation3], 1 }
 0x232   :  { %536 = vsyncpa [#allocation3 + $0x1], 1 }
 0x233   :  { %537 = vsyncpa [#allocation6], 1 }
 0x234   :  { %539 = vsyncpa [#allocation6 + $0x1], 1 }
 0x235   :  { %540 = vsyncpa [#allocation9], 1 }
 0x236   :  { %541 = vsyncpa [#allocation4], 1 }
 0x237   :  { %543 = vsyncpa [#allocation4 + $0x1], 1 }

</bundles_post_ra>
